<compile_context>
chip_gen: v7x
topology: tpu7x:2x2x1
jax: 0.10.0
libtpu: 0.0.40
codegen_flags: <defaults>
</compile_context>

<pallas_src>
import jax
import jax.numpy as jnp
from jax import lax
from jax.experimental import pallas as pl
from jax.experimental.pallas import tpu as pltpu


# ----------------------------------------------------------------------------
# Kernel: dense expert sweep with per-tile skip flags and H tiling.
# Grid = (num_token_tiles, num_experts, num_h_tiles).
# ----------------------------------------------------------------------------
def _moe_kernel(flags_ref,                      # SMEM, (n_t * E,) int32 (scalar prefetch)
                x_ref,                          # (TT, D)  compute dtype
                cw_ref,                         # (TT, E)  f32 dense combine weights
                w13_ref,                        # (1, 1, D, 2*TH) compute dtype
                w2_ref,                         # (1, 1, TH, D)   compute dtype
                out_ref,                        # (TT, D)  output dtype
                we_ref,                         # (TT, 1)  f32 scratch (this expert's weight)
                acc_ref):                       # (TT, D)  f32 scratch (accumulator)
    t = pl.program_id(0)
    e = pl.program_id(1)
    h = pl.program_id(2)
    n_e = pl.num_programs(1)
    n_h = pl.num_programs(2)
    E = cw_ref.shape[-1]                        # static
    TH = w2_ref.shape[2]                        # static

    # ---- first reduction step for this token tile: zero the accumulator ----
    @pl.when(jnp.logical_and(e == 0, h == 0))
    def _():
        acc_ref[...] = jnp.zeros_like(acc_ref)

    # ---- hoist the combine-weight extraction once per expert (not per H) ---
    @pl.when(h == 0)
    def _():
        lane = lax.broadcasted_iota(jnp.int32, cw_ref.shape, 1)
        we_ref[...] = jnp.sum(jnp.where(lane == e, cw_ref[...], 0.0),
                              axis=-1, keepdims=True)          # (TT, 1)

    # ---- skip all compute if no token in this tile routed to this expert ---
    flag = flags_ref[t * E + e]

    @pl.when(flag != 0)
    def _():
        x = x_ref[...]                                           # (TT, D)
        w13 = w13_ref[0, 0]                                      # (D, 2*TH)
        h13 = jnp.dot(x, w13, preferred_element_type=jnp.float32)  # (TT, 2*TH)
        h1 = h13[:, :TH]
        h3 = h13[:, TH:]
        # silu via EUP exp + approx reciprocal (keeps VALU slot free)
        gate = h1 * pl.reciprocal(1.0 + jnp.exp(-h1), approx=True)
        hv = gate * h3                                           # (TT, TH) f32
        # fold per-token combine weight into h (commutes with the w2 matmul)
        hv = (we_ref[...] * hv).astype(x.dtype)
        acc_ref[...] += jnp.dot(hv, w2_ref[0, 0],
                                preferred_element_type=jnp.float32)

    # ---- last reduction step: write the combined output --------------------
    @pl.when(jnp.logical_and(e == n_e - 1, h == n_h - 1))
    def _():
        out_ref[...] = acc_ref[...].astype(out_ref.dtype)


# ----------------------------------------------------------------------------
# Wrapper
# ----------------------------------------------------------------------------
def moe_ffn_pallas(x, router_w, w1, w3, w2, *, num_active_experts,
                   token_tile=None, h_tile=None,
                   compute_dtype=jnp.bfloat16, vmem_limit_bytes=None):
    """x: (B, S, D); router_w: (D, E); w1/w3: (E, D, H); w2: (E, H, D)."""
    B, S, D = x.shape
    T = B * S
    E, _, H = w1.shape
    k = num_active_experts

    cdt = jnp.dtype(compute_dtype)
    dsize = cdt.itemsize
    out_dtype = x.dtype
    osize = jnp.dtype(out_dtype).itemsize

    # ---- tile selection (TT multiple of 16 for bf16 sublane packing) --------
    sub = 16 if dsize == 2 else 8
    if token_tile is None:
        token_tile = 512 if T >= 512 else T
    TT = ((int(token_tile) + sub - 1) // sub) * sub
    n_t = -(-T // TT)
    T_pad = n_t * TT

    if h_tile is None:
        h_tile = H
        for cand in (512, 256, 128):
            if H > cand and H % cand == 0:
                h_tile = cand
                break
    TH = int(h_tile)
    assert H % TH == 0, "H must be divisible by the H tile"
    n_h = H // TH

    # ---- routing in f32 (XLA): dense combine weights + per-tile skip flags --
    xf = x.reshape(T, D)
    logits = xf.astype(jnp.float32) @ router_w.astype(jnp.float32)   # (T, E)
    scores = jax.nn.softmax(logits, axis=-1)
    topw, topi = lax.top_k(scores, k)                                # (T, k)
    onehot = jax.nn.one_hot(topi, E, dtype=jnp.float32)              # (T, k, E)
    cw = jnp.einsum('tk,tke->te', topw, onehot)                      # (T, E)
    sel = jnp.sum(onehot, axis=1) > 0.5                              # (T, E) bool

    # ---- pad token dim to a multiple of TT (padded rows have zero weight) ---
    xfc = xf.astype(cdt)
    if T_pad != T:
        pad = T_pad - T
        xfc = jnp.pad(xfc, ((0, pad), (0, 0)))
        cw = jnp.pad(cw, ((0, pad), (0, 0)))
        sel = jnp.pad(sel, ((0, pad), (0, 0)))
    flags = jnp.any(sel.reshape(n_t, TT, E), axis=1).astype(jnp.int32).reshape(-1)

    # ---- pack weights: fused (w1|w3), H-tiled (pre-pack once in real use) ---
    w1r = w1.reshape(E, D, n_h, TH).transpose(0, 2, 1, 3)            # (E, n_h, D, TH)
    w3r = w3.reshape(E, D, n_h, TH).transpose(0, 2, 1, 3)            # (E, n_h, D, TH)
    w13 = jnp.concatenate([w1r, w3r], axis=-1).astype(cdt)           # (E, n_h, D, 2*TH)
    w2r = w2.reshape(E, n_h, TH, D).astype(cdt)                      # (E, n_h, TH, D)

    # ---- explicit VMEM budget from the actual block sizes -------------------
    if vmem_limit_bytes is None:
        est = (2 * (TT * D * dsize                 # x tile (double buffered)
                    + TT * E * 4                   # combine weights tile
                    + D * 2 * TH * dsize           # fused w13 block
                    + TH * D * dsize               # w2 block
                    + TT * D * osize)              # output tile
               + TT * D * 4                        # f32 accumulator
               + TT * 128 * 4)                     # (TT, 1) scratch, lane padded
        # TODO(synk): on v7x (64 MiB physical VMEM) pick TT/TH so est <= ~56 MiB.
        vmem_limit_bytes = int(min(max(est + (8 << 20), 32 << 20), 100 << 20))

    grid_spec = pltpu.PrefetchScalarGridSpec(
        num_scalar_prefetch=1,
        grid=(n_t, E, n_h),
        in_specs=[
            pl.BlockSpec((TT, D), lambda t, e, h, flags: (t, 0)),            # x tile
            pl.BlockSpec((TT, E), lambda t, e, h, flags: (t, 0)),            # combine w
            pl.BlockSpec((1, 1, D, 2 * TH), lambda t, e, h, flags: (e, h, 0, 0)),  # w13
            pl.BlockSpec((1, 1, TH, D), lambda t, e, h, flags: (e, h, 0, 0)),      # w2
        ],
        out_specs=pl.BlockSpec((TT, D), lambda t, e, h, flags: (t, 0)),
        scratch_shapes=[
            pltpu.VMEM((TT, 1), jnp.float32),      # this-expert combine weight
            pltpu.VMEM((TT, D), jnp.float32),      # f32 output accumulator
        ],
    )

    out = pl.pallas_call(
        _moe_kernel,
        out_shape=jax.ShapeDtypeStruct((T_pad, D), out_dtype),
        grid_spec=grid_spec,
        compiler_params=pltpu.CompilerParams(
            dimension_semantics=("parallel", "arbitrary", "arbitrary"),
            vmem_limit_bytes=vmem_limit_bytes,
        ),
    )(flags, xfc, cw, w13, w2r)

    return out[:T].reshape(B, S, D)


# ----------------------------------------------------------------------------
# Pure-JAX reference mirroring the PyTorch forward (raw top-k softmax weights).
# ----------------------------------------------------------------------------
def moe_ref(x, router_w, w1, w3, w2, num_active_experts):
    B, S, D = x.shape
    xf = x.reshape(-1, D)
    scores = jax.nn.softmax(xf @ router_w, axis=-1)
    topw, topi = lax.top_k(scores, num_active_experts)

    out = jnp.zeros_like(xf)
    for j in range(num_active_experts):
        w = topw[:, j:j + 1]
        idx = topi[:, j]
        w1e, w3e, w2e = w1[idx], w3[idx], w2[idx]
        h = jax.nn.silu(jnp.einsum('td,tdh->th', xf, w1e)) \
            * jnp.einsum('td,tdh->th', xf, w3e)
        out = out + w * jnp.einsum('th,thd->td', h, w2e)
    return out.reshape(B, S, D)


if __name__ == "__main__":
    # Small shapes consistent with the module's constructor arithmetic.
    bsz, seqlen, dim = 2, 8, 32
    num_total_experts, num_active_experts = 4, 2
    multiple_of, hidden_dim_arg = 32, 96
    ffn_dim_multiplier = None

    # Replicate MoEFeedForward.__init__ hidden_dim computation.
    hidden_dim = int(2 * hidden_dim_arg / 3)
    if ffn_dim_multiplier is not None:
        hidden_dim = int(ffn_dim_multiplier * hidden_dim)
    hidden_dim = multiple_of * ((hidden_dim + multiple_of - 1) // multiple_of)
    assert hidden_dim % num_active_experts == 0
    hidden_dim = hidden_dim // num_active_experts
    assert hidden_dim % 8 == 0                      # -> 32 per-expert hidden dim

    key = jax.random.PRNGKey(0)
    kx, kr, k1, k2, k3 = jax.random.split(key, 5)
    x = jax.random.normal(kx, (bsz, seqlen, dim), jnp.float32)
    # router stored as (dim, E) so the wrapper computes x @ Wr (== nn.Linear)
    router_w = jax.random.normal(kr, (dim, num_total_experts), jnp.float32) * 0.1
    w1 = jax.random.normal(k1, (num_total_experts, dim, hidden_dim), jnp.float32) * 0.1
    w3 = jax.random.normal(k3, (num_total_experts, dim, hidden_dim), jnp.float32) * 0.1
    w2 = jax.random.normal(k2, (num_total_experts, hidden_dim, dim), jnp.float32) * 0.1

    out = moe_ffn_pallas(x, router_w, w1, w3, w2,
                         num_active_experts=num_active_experts)
    out = jax.block_until_ready(out)

    ref = moe_ref(x, router_w, w1, w3, w2, num_active_experts)
    assert out.shape == (bsz, seqlen, dim)
    err = jnp.max(jnp.abs(out - ref))
    # bf16 FFN compute (f32 routing + f32 accumulation) vs f32 reference.
    assert jnp.allclose(out, ref, atol=3e-2, rtol=3e-2), f"max err {err}"
    print("KERNEL_OK")
</pallas_src>

<mosaic_0001>
module attributes {stable_mosaic.version = 11 : i64} {
  func.func @_moe_kernel(%arg0: i32, %arg1: i32, %arg2: i32, %arg3: memref<4xi32, #tpu.memory_space<smem>>, %arg4: memref<16x32xbf16, #tpu.memory_space<vmem>>, %arg5: memref<16x4xf32, #tpu.memory_space<vmem>>, %arg6: memref<1x1x32x64xbf16, #tpu.memory_space<vmem>>, %arg7: memref<1x1x32x32xbf16, #tpu.memory_space<vmem>>, %arg8: memref<16x32xf32, #tpu.memory_space<vmem>>, %arg9: memref<16x1xf32, #tpu.memory_space<vmem>>, %arg10: memref<16x32xf32, #tpu.memory_space<vmem>>) attributes {dimension_semantics = [#tpu.dimension_semantics<parallel>, #tpu.dimension_semantics<arbitrary>, #tpu.dimension_semantics<arbitrary>], iteration_bounds = array<i64: 1, 4, 1>, scalar_prefetch = 1 : i64, scratch_operands = 2 : i64, tpu.core_type = #tpu.core_type<tc>, window_params = [{transform_indices = @transform_0, window_bounds = array<i64: 16, 32>}, {transform_indices = @transform_1, window_bounds = array<i64: 16, 4>}, {transform_indices = @transform_2, window_bounds = array<i64: 1, 1, 32, 64>}, {transform_indices = @transform_3, window_bounds = array<i64: 1, 1, 32, 32>}, {transform_indices = @transform_4, window_bounds = array<i64: 16, 32>}]} {
    %c0_i32 = arith.constant 0 : i32
    %0 = arith.cmpi eq, %arg1, %c0_i32 : i32
    %c0_i32_0 = arith.constant 0 : i32
    %1 = arith.cmpi eq, %arg2, %c0_i32_0 : i32
    %2 = arith.andi %0, %1 : i1
    %3 = arith.extui %2 : i1 to i32
    %c0_i32_1 = arith.constant 0 : i32
    %4 = arith.cmpi ne, %3, %c0_i32_1 : i32
    scf.if %4 {
      %cst = arith.constant 0.000000e+00 : f32
      %20 = vector.broadcast %cst : f32 to vector<16x32xf32>
      %c0 = arith.constant 0 : index
      %c0_8 = arith.constant 0 : index
      %21 = vector.load %arg10[%c0, %c0_8] : memref<16x32xf32, #tpu.memory_space<vmem>>, vector<16x32xf32>
      tpu.vector_store %arg10[%c0, %c0_8], %20 {strides = array<i32>} : memref<16x32xf32, #tpu.memory_space<vmem>>, vector<16x32xf32>,
    } else {
    }
    %c0_i32_2 = arith.constant 0 : i32
    %5 = arith.cmpi eq, %arg2, %c0_i32_2 : i32
    %6 = arith.extui %5 : i1 to i32
    %c0_i32_3 = arith.constant 0 : i32
    %7 = arith.cmpi ne, %6, %c0_i32_3 : i32
    scf.if %7 {
      %20 = tpu.iota {dimensions = array<i32: 1>} : vector<16x4xi32>
      %21 = vector.broadcast %arg1 : i32 to vector<16x4xi32>
      %22 = arith.cmpi eq, %20, %21 : vector<16x4xi32>
      %c0 = arith.constant 0 : index
      %c0_8 = arith.constant 0 : index
      %23 = vector.load %arg5[%c0, %c0_8] : memref<16x4xf32, #tpu.memory_space<vmem>>, vector<16x4xf32>
      %cst = arith.constant 0.000000e+00 : f32
      %24 = vector.broadcast %cst : f32 to vector<16x4xf32>
      %25 = arith.select %22, %23, %24 : vector<16x4xi1>, vector<16x4xf32>
      %cst_9 = arith.constant dense<0.000000e+00> : vector<16xf32>
      %26 = vector.multi_reduction <add>, %25, %cst_9 [1] : vector<16x4xf32> to vector<16xf32>
      %27 = vector.shape_cast %26 : vector<16xf32> to vector<16x1xf32>
      %c0_10 = arith.constant 0 : index
      %c0_11 = arith.constant 0 : index
      %28 = vector.load %arg9[%c0_10, %c0_11] : memref<16x1xf32, #tpu.memory_space<vmem>>, vector<16x1xf32>
      tpu.vector_store %arg9[%c0_10, %c0_11], %27 {strides = array<i32>} : memref<16x1xf32, #tpu.memory_space<vmem>>, vector<16x1xf32>,
    } else {
    }
    %c4_i32 = arith.constant 4 : i32
    %8 = arith.muli %arg0, %c4_i32 : i32
    %9 = arith.addi %8, %arg1 : i32
    %10 = arith.index_cast %9 : i32 to index
    %11 = memref.load %arg3[%10] : memref<4xi32, #tpu.memory_space<smem>>
    %c0_i32_4 = arith.constant 0 : i32
    %12 = arith.cmpi ne, %11, %c0_i32_4 : i32
    %13 = arith.extui %12 : i1 to i32
    %c0_i32_5 = arith.constant 0 : i32
    %14 = arith.cmpi ne, %13, %c0_i32_5 : i32
    scf.if %14 {
      %c0 = arith.constant 0 : index
      %c0_8 = arith.constant 0 : index
      %20 = vector.load %arg4[%c0, %c0_8] : memref<16x32xbf16, #tpu.memory_space<vmem>>, vector<16x32xbf16>
      %c0_9 = arith.constant 0 : index
      %c0_10 = arith.constant 0 : index
      %c0_11 = arith.constant 0 : index
      %c0_12 = arith.constant 0 : index
      %21 = vector.load %arg6[%c0_9, %c0_10, %c0_11, %c0_12] : memref<1x1x32x64xbf16, #tpu.memory_space<vmem>>, vector<1x1x32x64xbf16>
      %22 = vector.shape_cast %21 : vector<1x1x32x64xbf16> to vector<32x64xbf16>
      %cst = arith.constant dense<0.000000e+00> : vector<16x64xf32>
      %23 = tpu.matmul %20, %22, %cst {dimension_numbers = #tpu.dot_dimension_numbers<[1], [0], [0], [1], [0, 0, 1, 1], [], []>} : vector<16x32xbf16>, vector<32x64xbf16>, vector<16x64xf32> -> vector<16x64xf32>
      %24 = vector.extract_strided_slice %23 {offsets = [0, 0], sizes = [16, 32], strides = [1, 1]} : vector<16x64xf32> to vector<16x32xf32>
      %25 = vector.extract_strided_slice %23 {offsets = [0, 32], sizes = [16, 32], strides = [1, 1]} : vector<16x64xf32> to vector<16x32xf32>
      %cst_13 = arith.constant 0.000000e+00 : f32
      %26 = vector.broadcast %cst_13 : f32 to vector<16x32xf32>
      %27 = arith.subf %26, %24 : vector<16x32xf32>
      %28 = math.exp %27 : vector<16x32xf32>
      %cst_14 = arith.constant 1.000000e+00 : f32
      %29 = vector.broadcast %cst_14 : f32 to vector<16x32xf32>
      %30 = arith.addf %29, %28 : vector<16x32xf32>
      %31 = tpu.reciprocal %30 {approx = true} : vector<16x32xf32> -> vector<16x32xf32>
      %32 = arith.mulf %24, %31 : vector<16x32xf32>
      %33 = arith.mulf %32, %25 : vector<16x32xf32>
      %c0_15 = arith.constant 0 : index
      %c0_16 = arith.constant 0 : index
      %34 = vector.load %arg9[%c0_15, %c0_16] : memref<16x1xf32, #tpu.memory_space<vmem>>, vector<16x1xf32>
      %35 = vector.broadcast %34 : vector<16x1xf32> to vector<16x32xf32>
      %36 = arith.mulf %35, %33 : vector<16x32xf32>
      %37 = arith.truncf %36 : vector<16x32xf32> to vector<16x32xbf16>
      %c0_17 = arith.constant 0 : index
      %c0_18 = arith.constant 0 : index
      %38 = vector.load %arg10[%c0_17, %c0_18] : memref<16x32xf32, #tpu.memory_space<vmem>>, vector<16x32xf32>
      %c0_19 = arith.constant 0 : index
      %c0_20 = arith.constant 0 : index
      %c0_21 = arith.constant 0 : index
      %c0_22 = arith.constant 0 : index
      %39 = vector.load %arg7[%c0_19, %c0_20, %c0_21, %c0_22] : memref<1x1x32x32xbf16, #tpu.memory_space<vmem>>, vector<1x1x32x32xbf16>
      %40 = vector.shape_cast %39 : vector<1x1x32x32xbf16> to vector<32x32xbf16>
      %cst_23 = arith.constant dense<0.000000e+00> : vector<16x32xf32>
      %41 = tpu.matmul %37, %40, %cst_23 {dimension_numbers = #tpu.dot_dimension_numbers<[1], [0], [0], [1], [0, 0, 1, 1], [], []>} : vector<16x32xbf16>, vector<32x32xbf16>, vector<16x32xf32> -> vector<16x32xf32>
      %42 = arith.addf %38, %41 : vector<16x32xf32>
      %c0_24 = arith.constant 0 : index
      %c0_25 = arith.constant 0 : index
      %43 = vector.load %arg10[%c0_24, %c0_25] : memref<16x32xf32, #tpu.memory_space<vmem>>, vector<16x32xf32>
      tpu.vector_store %arg10[%c0_24, %c0_25], %42 {strides = array<i32>} : memref<16x32xf32, #tpu.memory_space<vmem>>, vector<16x32xf32>,
    } else {
    }
    %c3_i32 = arith.constant 3 : i32
    %15 = arith.cmpi eq, %arg1, %c3_i32 : i32
    %c0_i32_6 = arith.constant 0 : i32
    %16 = arith.cmpi eq, %arg2, %c0_i32_6 : i32
    %17 = arith.andi %15, %16 : i1
    %18 = arith.extui %17 : i1 to i32
    %c0_i32_7 = arith.constant 0 : i32
    %19 = arith.cmpi ne, %18, %c0_i32_7 : i32
    scf.if %19 {
      %c0 = arith.constant 0 : index
      %c0_8 = arith.constant 0 : index
      %20 = vector.load %arg10[%c0, %c0_8] : memref<16x32xf32, #tpu.memory_space<vmem>>, vector<16x32xf32>
      %c0_9 = arith.constant 0 : index
      %c0_10 = arith.constant 0 : index
      %21 = vector.load %arg8[%c0_9, %c0_10] : memref<16x32xf32, #tpu.memory_space<vmem>>, vector<16x32xf32>
      tpu.vector_store %arg8[%c0_9, %c0_10], %20 {strides = array<i32>} : memref<16x32xf32, #tpu.memory_space<vmem>>, vector<16x32xf32>,
    } else {
    }
    return
  }
  func.func @transform_0(%arg0: i32, %arg1: i32, %arg2: i32, %arg3: memref<4xi32, #tpu.memory_space<smem>>) -> (i32, i32) {
    %c0_i32 = arith.constant 0 : i32
    %c0_i32_0 = arith.constant 0 : i32
    return %arg0, %c0_i32 : i32, i32
  }
  func.func @transform_1(%arg0: i32, %arg1: i32, %arg2: i32, %arg3: memref<4xi32, #tpu.memory_space<smem>>) -> (i32, i32) {
    %c0_i32 = arith.constant 0 : i32
    %c0_i32_0 = arith.constant 0 : i32
    return %arg0, %c0_i32 : i32, i32
  }
  func.func @transform_2(%arg0: i32, %arg1: i32, %arg2: i32, %arg3: memref<4xi32, #tpu.memory_space<smem>>) -> (i32, i32, i32, i32) {
    %c0_i32 = arith.constant 0 : i32
    %c0_i32_0 = arith.constant 0 : i32
    %c0_i32_1 = arith.constant 0 : i32
    return %arg1, %arg2, %c0_i32, %c0_i32_0 : i32, i32, i32, i32
  }
  func.func @transform_3(%arg0: i32, %arg1: i32, %arg2: i32, %arg3: memref<4xi32, #tpu.memory_space<smem>>) -> (i32, i32, i32, i32) {
    %c0_i32 = arith.constant 0 : i32
    %c0_i32_0 = arith.constant 0 : i32
    %c0_i32_1 = arith.constant 0 : i32
    return %arg1, %arg2, %c0_i32, %c0_i32_0 : i32, i32, i32, i32
  }
  func.func @transform_4(%arg0: i32, %arg1: i32, %arg2: i32, %arg3: memref<4xi32, #tpu.memory_space<smem>>) -> (i32, i32) {
    %c0_i32 = arith.constant 0 : i32
    %c0_i32_0 = arith.constant 0 : i32
    return %arg0, %c0_i32 : i32, i32
  }
}

</mosaic_0001>

<bundles_post_ra>
// kernel: tpu_custom_call.1
= control target key start
LH: loop header
LB: loop body
LE: loop exit
PB: predicated region body
PF: predicated region fallthrough
CT: control target
= control target key end

     0   :  { %s1267_s0 = inlined_call_operand.vmem [shape: s32[4], index: 0, kind: input, shape index: {}]   ;;  %s1268_s1 = inlined_call_operand.vmem [shape: bf16[16,32], index: 1, kind: input, shape index: {}]   ;;  %s1269_s2 = inlined_call_operand.vmem [shape: f32[16,4], index: 2, kind: input, shape index: {}]   ;;  %s1270_s3 = inlined_call_operand.hbm [shape: bf16[4,1,32,64], index: 3, kind: input, shape index: {}]   ;;  %s1271_s4 = inlined_call_operand.hbm [shape: bf16[4,1,32,32], index: 4, kind: input, shape index: {}]   ;;  %s1272_s5 = inlined_call_operand.hbm [shape: f32[16,32], index: 5, kind: output, shape index: {}]  }
   0x1   :  { %s10_s20 = sshll.u32 %s1267_s0, 4  ;;  %s11_s20 = int_to_ptr.vmem [resolvable:$true] %s10_s20 }
   0x2   :  { %s827_s21 = scalar_lea.vmem %s11_s20, 16  ;;  %p832_p1 = scmp.lt.s32.totalorder %s11_s20, %s11_s20 }
   0x3   :  { %p828_p0 = scmp.ne.s32.totalorder %s11_s20, %s827_s21  ;;  %p833_p2 = scmp.lt.s32.totalorder %s827_s21, %s827_s21 }
   0x5   :  { %p834_p3 = por %p833_p2, %p832_p1 }
   0x7   :  { %p835_p4 = pnand %p834_p3, %p828_p0 }
   0x9   :  { %838 = shalt.err (!%p835_p4)  }
   0xa   :  { %s987_s22 = smov [#allocation5]  }
   0xb   :  { %13 = dma.vmem_to_smem %s11_s20, 16, %s987_s22, [#allocation4] }
   0xc   :  { %949 = dma.done.wait [#allocation4], 16 }
   0xd   :  { %950 = vsyncadd [#allocation4], 4294967280 }
   0xe   :  { %15 = sfence }
   0xf   :  { %16 = vsyncpa [#allocation7], 0 }
  0x10   :  { %18 = vsyncpa [#allocation7 + $0x1], 0 }
  0x11   :  { %19 = vsyncpa [#allocation10], 0 }
  0x12   :  { %21 = vsyncpa [#allocation10 + $0x1], 0 }
  0x13   :  { %22 = vsyncpa [#allocation8], 0  ;;  %s1033_s23 = smov 0   ;;  %s1035_s0 = smov 0  }
  0x14   :  { %s1037_s24 = smov 0   ;;  %s1039_s25 = smov 0  }
  0x15   :  { %s1041_s26 = smov 0   ;;  %s1043_s27 = smov 0  }
  0x16 LB: > { %s682_s28 = sadd.s32 4294967295, %s985_s27   ;;  %s43_s29 = sadd.s32 1, %s981_s26  ;;  %s985_s27 = sphi %s1043_s27, %s28_s27   ;;  %s981_s26 = sphi %s1041_s26, %s1284_s26   ;;  %s977_s25 = sphi %s1039_s25, %s1283_s25   ;;  %s973_s24 = sphi %s1037_s24, %s1282_s24   ;;  %s969_s0 = sphi %s1035_s0, %s1281_s0   ;;  %s965_s23 = sphi %s1033_s23, %s1280_s23  }
  0x17   : > { %p45_p5 = scmp.ge.s32.totalorder %s43_s29, 4  ;;  %s108_s30 = sadd.s32 1, %s973_s24 }
  0x18   : > { %p115_p6 = scmp.ne.s32.totalorder %s973_s24, %s969_s0  ;;  %p116_p7 = scmp.eq.s32.totalorder %s985_s27, 0 }
  0x19   : > { %s1286_s29 = smov (%p45_p5, %s43_s29), 0  ;;  %p121_p9 = scmp.ne.s32.totalorder %s969_s0, %s965_s23 }
  0x1a   : > { %p1069_p8 = por %p116_p7, %p115_p6  ;;  %s103_s7 = ssub.s32 %s981_s26, %s1286_s29 }
  0x1b   : > { %p122_p10 = scmp.eq.s32.totalorder %s682_s28, 0  ;;  %p106_p11 = scmp.eq.s32.totalorder %s103_s7, 0 }
  0x1c   : > { %p751_p13 = scmp.lt.s32.totalorder %s985_s27, 4  ;;  %s1087_s10 = sand.u32 1, %s973_s24  }
  0x1d   : > { %p1078_p12 = por %p122_p10, %p121_p9  ;;  %s710_s11 = sshll.u32 %s981_s26, 8 }
  0x1e   : > { %s1084_s9 = scalar_select %p106_p11, %s973_s24, %s108_s30  }
  0x1f   : > { %s1275_s8 = scalar_select %p1078_p12, 1, 0 }
  0x20   : > { %s687_s12 = sshll.u32 %s1087_s10, 4  ;;  %s1096_s15 = scalar_lea.hbm %s1270_s3, %s710_s11 }
  0x21   : > { %s221_s16 = scalar_lea.vmem [#allocation6], %s687_s12  ;;  %p1102_p0 = pnand %p751_p13, %p1069_p8 }
  0x22   : > { %s230_s17 = sshll.u32 %s221_s16, 4  ;;  %s218_s19 = scalar_lea.sflag [#allocation7], %s1087_s10  ;;  %s1106_s17 = int_to_ptr.vmem [resolvable:$true] %s230_s17 }
  0x23   : > { %s839_s20 = scalar_lea.hbm %s1096_s15, 256  ;;  %p841_p2 = pneg %p1102_p0 }
  0x24   : > { %p840_p1 = scmp.ne.s32.totalorder %s1096_s15, %s839_s20  ;;  %s844_s23 = scalar_lea.hbm %s1270_s3, 1024 }
  0x25   : > { %p845_p5 = scmp.lt.u32.totalorder %s1096_s15, %s1270_s3  ;;  %p846_p6 = scmp.lt.u32.totalorder %s844_s23, %s839_s20 }
  0x26   : > { %p842_p3 = pnand %p841_p2, %p840_p1  ;;  %p848_p8 = scmp.lt.u32.totalorder %s839_s20, %s1096_s15 }
  0x27   : > { %p847_p7 = por %p846_p6, %p845_p5 }
  0x28   : > { %p843_p4 = pneg %p842_p3 }
  0x29   : > { %p849_p9 = por %p848_p8, %p847_p7 }
  0x2b   : > { %p850_p10 = pnand %p849_p9, %p843_p4 }
  0x2d   : > { %853 = shalt.err (!%p850_p10)
}
  0x2e   : > { %s854_s7 = scalar_lea.vmem %s1106_s17, 256  ;;  %s988_s13 = smov [#allocation6]  }
  0x2f   : > { %p855_p11 = scmp.ne.s32.totalorder %s1106_s17, %s854_s7  ;;  %s859_s14 = sshll.u32 %s988_s13, 4  ;;  %s860_s14 = int_to_ptr.vmem [resolvable:$false] %s859_s14 }
  0x30   : > { %s861_s16 = scalar_lea.vmem %s860_s14, 512  ;;  %p862_p3 = scmp.lt.s32.totalorder %s1106_s17, %s860_s14 }
  0x31   : > { %p857_p13 = pnand %p855_p11, %p841_p2  ;;  %p863_p5 = scmp.lt.s32.totalorder %s861_s16, %s854_s7 }
  0x33   : > { %p858_p1 = pneg %p857_p13  ;;  %p864_p6 = por %p863_p5, %p862_p3 }
  0x35   : > { %p865_p7 = pnand %p864_p6, %p858_p1 }
  0x37   : > { %868 = shalt.err (!%p865_p7)
}
  0x38   : > { %s989_s20 = smov 64   ;;  %s990_s21 = smov 4  }
  0x39   : > { %747 = dma.hbm_to_vmem [thread:$0]  (!%p1102_p0), %s1096_s15, 256, %s1106_s17, %s218_s19, %s989_s20, %s989_s20, %s990_s21  }
  0x3a   : > { %p693_p4 = scmp.ge.s32.totalorder %s985_s27, 1  ;;  %p261_p8 = scmp.lt.s32.totalorder %s985_s27, 5 }
  0x3b   : > { %s1150_s6 = scalar_lea.hbm %s1271_s4, %s710_s11  ;;  %s244_s7 = scalar_lea.vmem [#allocation9], %s687_s12 }
  0x3c   : > { %p1141_p9 = pnand %p693_p4, %p261_p8  ;;  %s253_s13 = sshll.u32 %s244_s7, 4  ;;  %s1154_s13 = int_to_ptr.vmem [resolvable:$true] %s253_s13 }
  0x3d   : > { %s241_s15 = scalar_lea.sflag [#allocation10], %s1087_s10  ;;  %s869_s17 = scalar_lea.hbm %s1150_s6, 256 }
  0x3e   : > { %p870_p10 = scmp.ne.s32.totalorder %s1150_s6, %s869_s17  ;;  %s874_s11 = scalar_lea.hbm %s1271_s4, 1024 }
  0x3f   : > { %p875_p1 = scmp.lt.u32.totalorder %s1150_s6, %s1271_s4  ;;  %p876_p3 = scmp.lt.u32.totalorder %s874_s11, %s869_s17 }
  0x40   : > { %p872_p11 = pnand %p870_p10, %p841_p2  ;;  %p878_p6 = scmp.lt.u32.totalorder %s869_s17, %s1150_s6 }
  0x41   : > { %p877_p5 = por %p876_p3, %p875_p1 }
  0x42   : > { %p873_p13 = pneg %p872_p11 }
  0x43   : > { %p879_p7 = por %p878_p6, %p877_p5 }
  0x45   : > { %p880_p4 = pnand %p879_p7, %p873_p13 }
  0x47   : > { %883 = shalt.err (!%p880_p4)
}
  0x48   : > { %s884_s12 = scalar_lea.vmem %s1154_s13, 256  ;;  %s991_s30 = smov [#allocation9]  }
  0x49   : > { %p885_p8 = scmp.ne.s32.totalorder %s1154_s13, %s884_s12  ;;  %s889_s7 = sshll.u32 %s991_s30, 4  ;;  %s890_s7 = int_to_ptr.vmem [resolvable:$false] %s889_s7 }
  0x4a   : > { %s891_s19 = scalar_lea.vmem %s890_s7, 512  ;;  %p892_p12 = scmp.lt.s32.totalorder %s1154_s13, %s890_s7 }
  0x4b   : > { %p887_p10 = pnand %p885_p8, %p841_p2  ;;  %p893_p1 = scmp.lt.s32.totalorder %s891_s19, %s884_s12 }
  0x4d   : > { %p888_p11 = pneg %p887_p10  ;;  %p894_p3 = por %p893_p1, %p892_p12 }
  0x4f   : > { %p895_p5 = pnand %p894_p3, %p888_p11 }
  0x51   : > { %898 = shalt.err (!%p895_p5)
}
  0x52   : > { %750 = dma.hbm_to_vmem [thread:$0]  (!%p1102_p0), %s1150_s6, 256, %s1154_s13, %s241_s15, %s989_s20, %s989_s20, %s990_s21  }
  0x53   : > { %265 = sbr.rel (%p1141_p9) target bundleno = 707 (0x2c3), region = 36  ;;  %s267_s17 = sand.u32 (!%p1141_p9), 1, %s969_s0  }
  0x54   : > { %s694_s14 = sshll.u32 (!%p1141_p9), %s267_s17, 4  ;;  %s268_s11 = scalar_lea.sflag (!%p1141_p9), [#allocation7], %s267_s17 }
  0x55   : > { %s1188_s16 = scalar_lea.vmem (!%p1141_p9), [#allocation6], %s694_s14  ;;  %p1278_p12 = scmp.ne.s32.totalorder (!%p1141_p9), %s1275_s8, 0 }
  0x5a   : > { %952 = dma.done.wait (%p1278_p12), %s268_s11, 256  }
  0x5b   : > { %954 = vsyncadd (%p1278_p12), %s268_s11, 4294967040  ;;  %s277_s10 = scalar_lea.sflag [#allocation10], %s267_s17  ;;  %s1194_s18 = scalar_lea.vmem [#allocation9], %s694_s14 }
  0x5c   : > { %956 = dma.done.wait (%p1278_p12), %s277_s10, 256  }
  0x5d   : > { %958 = vsyncadd (%p1278_p12), %s277_s10, 4294967040  ;;  %p329_p0 = scmp.eq.s32.totalorder %s977_s25, 0 }
  0x5e   : > { %vm335_vm0 = vcmask (%p329_p0), 261120   ;;  %v992_v0 = vmov (%p329_p0), 0.0  }
  0x5f   : > { %334 = sbr.rel (!%p329_p0) target bundleno = 102 (0x66), region = 48  ;;  %336 = vst.msk [vmem:[#allocation3] sm:$0xff] (%p329_p0), %vm335_vm0, %v992_v0  ;;  %337 = vst.msk [vmem:[#allocation3 + $0x8] sm:$0xff] (%p329_p0), %vm335_vm0, %v992_v0 }
  0x66 PF: > { %v341_v1 = vlaneseq  ;;  %v343_v2 = vstv %s977_s25  ;;  %v345_v4 = vld [vmem:[%s1269_s2] sm:$0xff]  ;;  %v346_v5 = vld [vmem:[%s1269_s2 + $0x8] sm:$0xff]  ;;  %vm349_vm1 = vcmask 31744   ;;  %s361_s6 = sld [smem:[#allocation5 + %s977_s25]]  ;;  %vm356_vm3 = vcmask 7168  }
  0x68   : > { %v342_v3 = vand.u32 127, %v341_v1 }
  0x6a   : > { %vm344_vm2 = vcmp.eq.s32.totalorder %v342_v3, %v343_v2 }
  0x6b   : > { %v347_v6 = vsel %vm344_vm2, %v345_v4, 0.0  ;;  %v348_v7 = vsel %vm344_vm2, %v346_v5, 0.0 }
  0x6c   : > { %v350_v8 = vsel %vm349_vm1, %v347_v6, 0.0  ;;  %v353_v9 = vsel %vm349_vm1, %v348_v7, 0.0  ;;  %p697_p2 = scmp.eq.s32.totalorder %s361_s6, 0 }
  0x6d   : > { %351 = vadd.xlane.f32.xlu0 %v350_v8  ;;  %v814_v12 = vld [vmem:[%s1188_s16] sm:$0xff] (!%p697_p2)   ;;  %v993_v13 = vmov (!%p697_p2), 0.0   ;;  %v815_v14 = vld [vmem:[%s1188_s16 + $0x8] sm:$0xff] (!%p697_p2)   ;;  %vm994_vm4 = vmmov (!%p697_p2), 0   ;;  %v995_v16 = vmov (!%p697_p2), 0   ;;  %vm389_vm5 = vcmask (!%p697_p2), 261120  }
  0x6e   : > { %720 = vmatprep.subr.bf16.mxu0 (!%p697_p2), %v993_v13  ;;  %728 = vmatprep.subr.bf16.mxu1 (!%p697_p2), %v993_v13  ;;  %v816_v17 = vld [vmem:[%s1268_s1] sm:$0xff] (!%p697_p2)   ;;  %v818_v20 = vld [vmem:[%s1194_s18 + $0x8] sm:$0xff] (!%p697_p2)   ;;  %s996_s23 = smov (!%p697_p2), 96   ;;  %v471_v46 = vld [vmem:[#allocation3] sm:$0xff] (!%p697_p2) }
  0x6f   : > { %721 = vmatpush3.bf16.msra.mxu0 (!%p697_p2), %v814_v12  ;;  %724 = vmatprep.mubr.msk.bf16.mxu0 (!%p697_p2), %vm994_vm4, %v993_v13  ;;  %v817_v19 = vld [vmem:[%s1194_s18] sm:$0xff] (!%p697_p2)   ;;  %v472_v48 = vld [vmem:[#allocation3 + $0x8] sm:$0xff] (!%p697_p2) }
  0x70   : > { %722 = vmatprep.subr.bf16.mxu0 (!%p697_p2), %v993_v13  ;;  %732 = vmatprep.mubr.msk.bf16.mxu1 (!%p697_p2), %vm994_vm4, %v993_v13 }
  0x71   : > { %354 = vadd.xlane.f32.xlu0 %v353_v9  ;;  %729 = vmatpush3.bf16.msra.mxu1 (!%p697_p2), %v817_v19 }
  0x72   : > { %813 = vset.pattern.permute.xlu0 (!%p697_p2), %v995_v16  ;;  %730 = vmatprep.subr.bf16.mxu1 (!%p697_p2), %v993_v13 }
  0x73   : > { %723 = vmatpush3.bf16.msra.mxu0 (!%p697_p2), %v815_v14 }
  0x75   : > { %731 = vmatpush3.bf16.msra.mxu1 (!%p697_p2), %v818_v20 }
  0x76   : > { %725 = vmatmul.mubr.msk.bf16.vlgmr.msra.gmra.mrb[0].mxu0 (!%p697_p2), %vm389_vm5, %v816_v17 }
  0xf9   : > { %365 = sbr.rel (%p697_p2) target bundleno = 672 (0x2a0), region = 56 }
  0xfa   : > { %v352_v10 = vpop.xlane.xlu0 %351 }
  0xfb   : > { %357 = vst.msk [vmem:[#allocation2] sm:$0xff] %vm356_vm3, %v352_v10 }
  0xfe   : > { %v355_v11 = vpop.xlane.xlu0 %354 }
  0xff   : > { %358 = vst.msk [vmem:[#allocation2 + $0x8] sm:$0xff] %vm356_vm3, %v355_v11 }
 0x102   : > { %v456_v15 = vld [vmem:[#allocation2] sm:$0xff] }
 0x103   : > { %460 = vperm.xlu0 %813, %v456_v15  }
 0x106   : > { %v457_v18 = vld [vmem:[#allocation2 + $0x8] sm:$0xff] }
 0x107   : > { %465 = vperm.xlu0 %813, %v457_v18  }
 0x149   : > { %v427_v21 = vpop.f32.mrb[0].mxu0 }
 0x14a   : > { %448 = vrot.lane.b32.xlu1 %v427_v21, %s996_s23  ;;  %v726_v22 = vpop.f32.mrb[1].mxu0  ;;  %v434_v25 = vsub.f32 0.0, %v427_v21 }
 0x14b   : > { %v430_v23 = vpop.f32.mrb[2].mxu0 }
 0x14c   : > { %v727_v24 = vpop.f32.mrb[3].mxu0  ;;  %v435_v26 = vsub.f32 0.0, %v430_v23  ;;  %v436_v27 = vmul.f32 1.442695, %v434_v25 }
 0x14e   : > { %450 = vrot.lane.b32.xlu1 %v430_v23, %s996_s23  ;;  %v438_v28 = vmul.f32 1.442695, %v435_v26  ;;  %819 = vpow2.f32 %v436_v27 }
 0x150   : > { %821 = vpow2.f32 %v438_v28 }
 0x158   : > { %v820_v29 = vpop.eup %819 }
 0x159   : > { %v440_v31 = vadd.f32 1.0, %v820_v29 }
 0x15a   : > { %v822_v30 = vpop.eup %821 }
 0x15b   : > { %v441_v32 = vadd.f32 1.0, %v822_v30  ;;  %823 = vrcp.f32 %v440_v31 }
 0x15d   : > { %825 = vrcp.f32 %v441_v32 }
 0x165   : > { %v824_v33 = vpop.eup %823 }
 0x166   : > { %v444_v37 = vmul.f32 %v824_v33, %v427_v21 }
 0x167   : > { %v826_v34 = vpop.eup %825 }
 0x168   : > { %v445_v39 = vmul.f32 %v826_v34, %v430_v23 }
 0x182   : > { %v461_v35 = vpop.permute.xlu0 %460 }
 0x186   : > { %v466_v42 = vpop.permute.xlu0 %465 }
 0x1bc   : > { %v449_v36 = vpop.permute.xlu1 %448 }
 0x1bd   : > { %v454_v38 = vmul.f32 %v449_v36, %v444_v37 }
 0x1bf   : > { %v468_v43 = vmul.f32 %v461_v35, %v454_v38 }
 0x1c0   : > { %v451_v40 = vpop.permute.xlu1 %450 }
 0x1c1   : > { %v455_v41 = vmul.f32 %v451_v40, %v445_v39 }
 0x1c3   : > { %v469_v44 = vmul.f32 %v466_v42, %v455_v41 }
 0x1c5   : > { %v470_v45 = vpack.c.bf16 %v469_v44, %v468_v43 }
 0x1c7   : > { %733 = vmatmul.mubr.msk.bf16.vlgmr.msra.gmra.mrb[0].mxu1 %vm389_vm5, %v470_v45 }
 0x29a   : > { %v526_v47 = vpop.f32.mrb[0].mxu1 }
 0x29b   : > { %v533_v49 = vadd.f32 %v526_v47, %v471_v46  ;;  %v734_v50 = vpop.f32.mrb[1].mxu1 }
 0x29c   : > { %v529_v51 = vpop.f32.mrb[2].mxu1 }
 0x29d   : > { %535 = vst.msk [vmem:[#allocation3] sm:$0xff] %vm389_vm5, %v533_v49  ;;  %v534_v52 = vadd.f32 %v529_v51, %v472_v48  ;;  %v735_v53 = vpop.f32.mrb[3].mxu1 }
 0x29f   : > { %536 = vst.msk [vmem:[#allocation3 + $0x8] sm:$0xff] %vm389_vm5, %v534_v52 }
 0x2a0 PF: > { %p537_p9 = scmp.eq.s32.totalorder %s977_s25, 3 }
 0x2a1   : > { %vm544_vm6 = vcmask (%p537_p9), 261120  }
 0x2a2   : > { %541 = sbr.rel (!%p537_p9) target bundleno = 681 (0x2a9), region = 60 }
 0x2a4   : > { %v542_v54 = vld [vmem:[#allocation3] sm:$0xff] (%p537_p9) }
 0x2a5   : > { %545 = vst.msk [vmem:[#allocation11] sm:$0xff] (%p537_p9), %vm544_vm6, %v542_v54 }
 0x2a6   : > { %v543_v55 = vld [vmem:[#allocation3 + $0x8] sm:$0xff] (%p537_p9) }
 0x2a7   : > { %546 = vst.msk [vmem:[#allocation11 + $0x8] sm:$0xff] (%p537_p9), %vm544_vm6, %v543_v55 }
 0x2a9 PF: > { %p1223_p13 = scmp.eq.s32.totalorder %s682_s28, 3  ;;  %s997_s30 = smov [#allocation11]  }
 0x2aa   : > { %s556_s7 = sshll.u32 %s997_s30, 4  ;;  %s557_s7 = int_to_ptr.vmem [resolvable:$true] %s556_s7 }
 0x2ab   : > { %s899_s19 = scalar_lea.vmem %s557_s7, 256  ;;  %p906_p8 = scmp.lt.s32.totalorder %s557_s7, %s557_s7 }
 0x2ac   : > { %p900_p6 = scmp.ne.s32.totalorder %s557_s7, %s899_s19  ;;  %p907_p10 = scmp.lt.s32.totalorder %s899_s19, %s899_s19 }
 0x2ae   : > { %p901_p7 = pnand %p900_p6, %p1223_p13  ;;  %p908_p11 = por %p907_p10, %p906_p8 }
 0x2b0   : > { %p902_p4 = pneg %p901_p7 }
 0x2b2   : > { %p909_p1 = pnand %p908_p11, %p902_p4 }
 0x2b4   : > { %912 = shalt.err (!%p909_p1)
}
 0x2b5   : > { %s913_s28 = scalar_lea.hbm %s1272_s5, 256 }
 0x2b6   : > { %p914_p3 = scmp.ne.s32.totalorder %s1272_s5, %s913_s28  ;;  %p919_p0 = scmp.lt.u32.totalorder %s913_s28, %s1272_s5 }
 0x2b8   : > { %p915_p5 = pnand %p914_p3, %p1223_p13 }
 0x2ba   : > { %p916_p12 = pneg %p915_p5 }
 0x2bc   : > { %p921_p2 = pnand %p919_p0, %p916_p12 }
 0x2be   : > { %924 = shalt.err (!%p921_p2)
}
 0x2bf   : > { %s998_s18 = smov 128   ;;  %s999_s20 = smov 8  }
 0x2c0   : > { %741 = dma.vmem_to_hbm [thread:$0]  (%p1223_p13), %s557_s7, 256, %s1272_s5, [#allocation8], %s998_s18, %s998_s18, %s999_s20  }
 0x2c1   : > { %960 = dma.done.wait (%p1223_p13), [#allocation8], 256  }
 0x2c2   : > { %962 = vsyncadd (%p1223_p13), [#allocation8], 4294967040 }
 0x2c3 PF: > { %s28_s27 = sadd.s32 1, %s985_s27   ;;  %s1280_s23 = smov %s969_s0 }
 0x2c4   : > { %p25_p9 = scmp.ge.s32.totalorder %s28_s27, 6   ;;  %s1281_s0 = smov %s973_s24 }
 0x2c5   : > { %s1282_s24 = smov %s1084_s9  ;;  %s1283_s25 = smov %s981_s26 }
 0x2c6   : > { %s1284_s26 = smov %s1286_s29  ;;  %27 = sbr.rel (!%p25_p9) target bundleno = 22 (0x16), region = 109 }
 0x2cd   :  { %572 = vsyncpa [#allocation7], 1 }
 0x2ce   :  { %574 = vsyncpa [#allocation7 + $0x1], 1 }
 0x2cf   :  { %575 = vsyncpa [#allocation10], 1 }
 0x2d0   :  { %577 = vsyncpa [#allocation10 + $0x1], 1 }
 0x2d1   :  { %578 = vsyncpa [#allocation8], 1 }
 0x2d2   :  { %580 = vsyncpa [#allocation8 + $0x1], 1 }

</bundles_post_ra>
